<compile_context>
chip_gen: v7x
topology: tpu7x:2x2x1
jax: 0.10.0
libtpu: 0.0.40
codegen_flags: <defaults>
</compile_context>

<pallas_src>
import functools

import jax
import jax.numpy as jnp
from jax.experimental import pallas as pl
from jax.experimental.pallas import tpu as pltpu


# ---------------------------------------------------------------------------
# Pass 1: fused Q/K/V 1x1-conv projections (once per (batch, sequence-tile)).
# ---------------------------------------------------------------------------
def _proj_kernel(q_ref, k_ref, v_ref,
                 wq_ref, wk_ref, wv_ref,
                 bq_ref, bk_ref, bv_ref,
                 qp_ref, kp_ref, vp_ref,
                 *, num_heads, compute_dtype):
    # q/k/v_ref: (1, C, TN);  w*_ref: (C, C) compute_dtype;  b*_ref: (C, 1) f32
    # qp_ref: (1, H, TN, d)   kp_ref: (1, H, d, TN)   vp_ref: (1, H, TN, d)
    c = q_ref.shape[1]
    d = c // num_heads

    def project(w_ref, x_ref, b_ref):
        x = x_ref[0].astype(compute_dtype)
        y = jnp.dot(w_ref[...], x, preferred_element_type=jnp.float32)  # (C, TN)
        return (y + b_ref[...]).astype(compute_dtype)

    qp = project(wq_ref, q_ref, bq_ref)   # scale already folded into Wq/bq
    kp = project(wk_ref, k_ref, bk_ref)
    vp = project(wv_ref, v_ref, bv_ref)

    # Split into per-head slabs (static unroll, H is small).  Q and V become
    # sequence-major (TN, d) so the attention matmuls are all standard-form.
    for h in range(num_heads):
        rows = slice(h * d, (h + 1) * d)
        qp_ref[0, h] = qp[rows, :].T      # (TN, d)
        kp_ref[0, h] = kp[rows, :]        # (d, TN)
        vp_ref[0, h] = vp[rows, :].T      # (TN, d)


# ---------------------------------------------------------------------------
# Pass 2: per (batch, query-tile, head) attention + single full-width merge.
# ---------------------------------------------------------------------------
def _attn_kernel(qp_ref, kp_ref, vp_ref, wm_ref, bm_ref,
                 o_ref, xh_ref, *, compute_dtype, approx_recip):
    # qp_ref: (1, H, TQ, d)  kp_ref: (1, H, d, N)  vp_ref: (1, H, N, d)
    # wm_ref: (C, C) compute_dtype (head-major columns)   bm_ref: (C, 1) f32
    # o_ref:  (1, C, TQ)     xh_ref: (C, TQ) f32 scratch (per-head rows)
    h = pl.program_id(2)
    num_h = pl.num_programs(2)
    d = qp_ref.shape[-1]

    qh = qp_ref[0, h]                     # (TQ, d)
    kh = kp_ref[0, h]                     # (d, N)
    vh = vp_ref[0, h]                     # (N, d)

    # Scores (scale folded into the Q projection): standard MXU matmul.
    s = jnp.dot(qh, kh, preferred_element_type=jnp.float32)          # (TQ, N)
    s = s - jnp.max(s, axis=-1, keepdims=True)
    # bf16 exp on the EUP when the compute dtype is bf16 (v6e/v7x); values <= 1.
    p = jnp.exp(s.astype(compute_dtype))                             # (TQ, N)
    denom = jnp.sum(p.astype(jnp.float32), axis=-1, keepdims=True)   # (TQ, 1)

    oh = jnp.dot(p, vh, preferred_element_type=jnp.float32)          # (TQ, d)
    # Deferred softmax normalization: O(TQ*d) instead of O(TQ*N).
    oh = oh * pl.reciprocal(denom, approx=approx_recip)

    # Place head h into rows [h*d, (h+1)*d) of the (C, TQ) merge slab.
    start = pl.multiple_of(h * d, d)
    xh_ref[pl.ds(start, d), :] = oh.T                                # (d, TQ)

    @pl.when(h == num_h - 1)
    def _():
        xall = xh_ref[...].astype(compute_dtype)                     # (C, TQ)
        out = jnp.dot(wm_ref[...], xall, preferred_element_type=jnp.float32)
        o_ref[0] = (out + bm_ref[...]).astype(o_ref.dtype)


def _pick_tile(n, t_max):
    """Largest tile <= t_max that evenly tiles n (multiple of 128 when tiled)."""
    if n <= t_max:
        return n
    t = (t_max // 128) * 128
    while t >= 128:
        if n % t == 0:
            return t
        t -= 128
    return n


def mha_forward(q, k, v, params, num_heads, *,
                compute_dtype=jnp.bfloat16,   # bf16 MXU operands by default
                approx_recip=True,            # EUP reciprocal (exact only for validation)
                tq_max=512, tn_max=512,
                vmem_limit_mb=64):            # raise to ~96-110 on v5e/v6e (128 MiB VMEM)
    """q, k, v: (B, d_model, N) float32 (PyTorch NCL). Returns (B, d_model, N)."""
    Wq, bq, Wk, bk, Wv, bv, Wm, bm = params
    B, C, N = q.shape
    H = num_heads
    assert C % H == 0
    d = C // H
    scale = 1.0 / float(d) ** 0.5

    # Head-major weight permutations.  PyTorch channel c of a projection output
    # maps to (dim i, head h) with c = i*H + h; we re-order to row/col h*d + i.
    def perm_rows(W):                     # (C, C) -> rows head-major
        return W.reshape(d, H, C).transpose(1, 0, 2).reshape(C, C)

    def perm_vec(b_):                     # (C,) -> (C, 1) head-major
        return b_.reshape(d, H).T.reshape(C, 1)

    wq_p = (perm_rows(Wq) * scale).astype(compute_dtype)   # fold 1/sqrt(d) into Q proj
    wk_p = perm_rows(Wk).astype(compute_dtype)
    wv_p = perm_rows(Wv).astype(compute_dtype)
    bq_p = (perm_vec(bq) * scale).astype(jnp.float32)
    bk_p = perm_vec(bk).astype(jnp.float32)
    bv_p = perm_vec(bv).astype(jnp.float32)
    # Merge: permute *input-channel* columns head-major; output channels unchanged.
    wm_p = Wm.reshape(C, d, H).transpose(0, 2, 1).reshape(C, C).astype(compute_dtype)
    bm_p = bm.reshape(C, 1).astype(jnp.float32)

    tn = _pick_tile(N, tn_max)
    tq = _pick_tile(N, tq_max)
    n_n = N // tn
    n_q = N // tq
    vmem_bytes = vmem_limit_mb * 1024 * 1024

    # ---------------- Pass 1: projections (once per sequence position) -------
    x_spec = pl.BlockSpec((1, C, tn), lambda b, n: (b, 0, n))
    w_spec = pl.BlockSpec((C, C), lambda b, n: (0, 0))     # constant-index: VMEM resident
    b_spec = pl.BlockSpec((C, 1), lambda b, n: (0, 0))

    proj_kernel = functools.partial(_proj_kernel, num_heads=H,
                                    compute_dtype=compute_dtype)

    qp4, kp4, vp4 = pl.pallas_call(
        proj_kernel,
        out_shape=(jax.ShapeDtypeStruct((B, H, N, d), compute_dtype),
                   jax.ShapeDtypeStruct((B, H, d, N), compute_dtype),
                   jax.ShapeDtypeStruct((B, H, N, d), compute_dtype)),
        grid=(B, n_n),
        in_specs=[x_spec, x_spec, x_spec,
                  w_spec, w_spec, w_spec,
                  b_spec, b_spec, b_spec],
        out_specs=(pl.BlockSpec((1, H, tn, d), lambda b, n: (b, 0, n, 0)),
                   pl.BlockSpec((1, H, d, tn), lambda b, n: (b, 0, 0, n)),
                   pl.BlockSpec((1, H, tn, d), lambda b, n: (b, 0, n, 0))),
        compiler_params=pltpu.CompilerParams(
            dimension_semantics=("parallel", "parallel"),
            vmem_limit_bytes=vmem_bytes),
    )(q, k, v, wq_p, wk_p, wv_p, bq_p, bk_p, bv_p)

    # ---------------- Pass 2: attention + merge ------------------------------
    attn_kernel = functools.partial(_attn_kernel, compute_dtype=compute_dtype,
                                    approx_recip=approx_recip)

    out = pl.pallas_call(
        attn_kernel,
        out_shape=jax.ShapeDtypeStruct((B, C, N), q.dtype),
        grid=(B, n_q, H),                 # heads innermost = merge-reduction axis
        in_specs=[
            pl.BlockSpec((1, H, tq, d), lambda b, qi, h: (b, 0, qi, 0)),
            pl.BlockSpec((1, H, d, N), lambda b, qi, h: (b, 0, 0, 0)),   # resident per batch
            pl.BlockSpec((1, H, N, d), lambda b, qi, h: (b, 0, 0, 0)),   # resident per batch
            pl.BlockSpec((C, C), lambda b, qi, h: (0, 0)),
            pl.BlockSpec((C, 1), lambda b, qi, h: (0, 0)),
        ],
        out_specs=pl.BlockSpec((1, C, tq), lambda b, qi, h: (b, 0, qi)),
        scratch_shapes=[pltpu.VMEM((C, tq), jnp.float32)],
        compiler_params=pltpu.CompilerParams(
            dimension_semantics=("parallel", "parallel", "arbitrary"),
            vmem_limit_bytes=vmem_bytes),
    )(qp4, kp4, vp4, wm_p, bm_p)
    return out


# ---------------------------------------------------------------------------
# Pure-JAX reference (mirrors the PyTorch module) and parameter init.
# ---------------------------------------------------------------------------
def mha_reference(q, k, v, params, num_heads):
    Wq, bq, Wk, bk, Wv, bv, Wm, bm = params
    B, C, N = q.shape
    dim = C // num_heads

    def proj(x, W, b):
        return jnp.einsum('oc,bcn->bon', W, x) + b[None, :, None]

    Qp = proj(q, Wq, bq).reshape(B, dim, num_heads, N)
    Kp = proj(k, Wk, bk).reshape(B, dim, num_heads, N)
    Vp = proj(v, Wv, bv).reshape(B, dim, num_heads, N)
    scores = jnp.einsum('bdhn,bdhm->bhnm', Qp, Kp) / (dim ** 0.5)
    prob = jax.nn.softmax(scores, axis=-1)
    x = jnp.einsum('bhnm,bdhm->bdhn', prob, Vp)
    return proj(x.reshape(B, C, N), Wm, bm)


def init_params(key, d_model):
    # Conv1d(d_model, d_model, 1) weights are (out, in, 1); kept here as (out, in).
    bound = 1.0 / (d_model ** 0.5)
    keys = jax.random.split(key, 8)
    params = []
    for i in range(4):  # proj_q, proj_k, proj_v, merge
        W = jax.random.uniform(keys[2 * i], (d_model, d_model), jnp.float32, -bound, bound)
        b = jax.random.uniform(keys[2 * i + 1], (d_model,), jnp.float32, -bound, bound)
        params.extend([W, b])
    return tuple(params)


if __name__ == "__main__":
    B, num_heads, d_model, N = 2, 4, 32, 16

    root = jax.random.PRNGKey(0)
    kq, kk, kv, kprm = jax.random.split(root, 4)
    q = jax.random.normal(kq, (B, d_model, N), jnp.float32)
    k = jax.random.normal(kk, (B, d_model, N), jnp.float32)
    v = jax.random.normal(kv, (B, d_model, N), jnp.float32)
    params = init_params(kprm, d_model)

    ref = mha_reference(q, k, v, params, num_heads)

    # Exact validation build: f32 MXU operands + exact reciprocal.
    out_f32 = jax.block_until_ready(
        mha_forward(q, k, v, params, num_heads,
                    compute_dtype=jnp.float32, approx_recip=False))
    assert out_f32.shape == (B, d_model, N)
    assert jnp.allclose(out_f32, ref, atol=1e-4, rtol=1e-4), \
        float(jnp.max(jnp.abs(out_f32 - ref)))

    # Default fast path: bf16 MXU operands, f32 softmax stats / accumulation.
    out = jax.block_until_ready(mha_forward(q, k, v, params, num_heads))
    assert out.shape == (B, d_model, N)
    assert jnp.allclose(out, ref, atol=5e-2, rtol=5e-2), \
        float(jnp.max(jnp.abs(out - ref)))

    print("KERNEL_OK")
</pallas_src>

<mosaic_0001>
module attributes {stable_mosaic.version = 11 : i64} {
  func.func @_proj_kernel(%arg0: i32, %arg1: i32, %arg2: memref<1x32x16xf32, #tpu.memory_space<vmem>>, %arg3: memref<1x32x16xf32, #tpu.memory_space<vmem>>, %arg4: memref<1x32x16xf32, #tpu.memory_space<vmem>>, %arg5: memref<32x32xf32, #tpu.memory_space<vmem>>, %arg6: memref<32x32xf32, #tpu.memory_space<vmem>>, %arg7: memref<32x32xf32, #tpu.memory_space<vmem>>, %arg8: memref<32x1xf32, #tpu.memory_space<vmem>>, %arg9: memref<32x1xf32, #tpu.memory_space<vmem>>, %arg10: memref<32x1xf32, #tpu.memory_space<vmem>>, %arg11: memref<1x4x16x8xf32, #tpu.memory_space<vmem>>, %arg12: memref<1x4x8x16xf32, #tpu.memory_space<vmem>>, %arg13: memref<1x4x16x8xf32, #tpu.memory_space<vmem>>) attributes {dimension_semantics = [#tpu.dimension_semantics<parallel>, #tpu.dimension_semantics<parallel>], iteration_bounds = array<i64: 2, 1>, scalar_prefetch = 0 : i64, scratch_operands = 0 : i64, tpu.core_type = #tpu.core_type<tc>, window_params = [{transform_indices = @transform_0, window_bounds = array<i64: 1, 32, 16>}, {transform_indices = @transform_1, window_bounds = array<i64: 1, 32, 16>}, {transform_indices = @transform_2, window_bounds = array<i64: 1, 32, 16>}, {pipeline_mode = #tpu.pipeline_mode<synchronous>, transform_indices = @transform_3, window_bounds = array<i64: 32, 32>}, {pipeline_mode = #tpu.pipeline_mode<synchronous>, transform_indices = @transform_4, window_bounds = array<i64: 32, 32>}, {pipeline_mode = #tpu.pipeline_mode<synchronous>, transform_indices = @transform_5, window_bounds = array<i64: 32, 32>}, {pipeline_mode = #tpu.pipeline_mode<synchronous>, transform_indices = @transform_6, window_bounds = array<i64: 32, 1>}, {pipeline_mode = #tpu.pipeline_mode<synchronous>, transform_indices = @transform_7, window_bounds = array<i64: 32, 1>}, {pipeline_mode = #tpu.pipeline_mode<synchronous>, transform_indices = @transform_8, window_bounds = array<i64: 32, 1>}, {transform_indices = @transform_9, window_bounds = array<i64: 1, 4, 16, 8>}, {transform_indices = @transform_10, window_bounds = array<i64: 1, 4, 8, 16>}, {transform_indices = @transform_11, window_bounds = array<i64: 1, 4, 16, 8>}]} {
    %c0 = arith.constant 0 : index
    %c0_0 = arith.constant 0 : index
    %c0_1 = arith.constant 0 : index
    %0 = vector.load %arg2[%c0, %c0_0, %c0_1] : memref<1x32x16xf32, #tpu.memory_space<vmem>>, vector<1x32x16xf32>
    %1 = vector.shape_cast %0 : vector<1x32x16xf32> to vector<32x16xf32>
    %c0_2 = arith.constant 0 : index
    %c0_3 = arith.constant 0 : index
    %2 = vector.load %arg5[%c0_2, %c0_3] : memref<32x32xf32, #tpu.memory_space<vmem>>, vector<32x32xf32>
    %cst = arith.constant dense<0.000000e+00> : vector<32x16xf32>
    %3 = tpu.matmul %2, %1, %cst {dimension_numbers = #tpu.dot_dimension_numbers<[1], [0], [0], [1], [0, 0, 1, 1], [], []>} : vector<32x32xf32>, vector<32x16xf32>, vector<32x16xf32> -> vector<32x16xf32>
    %c0_4 = arith.constant 0 : index
    %c0_5 = arith.constant 0 : index
    %4 = vector.load %arg8[%c0_4, %c0_5] : memref<32x1xf32, #tpu.memory_space<vmem>>, vector<32x1xf32>
    %5 = vector.broadcast %4 : vector<32x1xf32> to vector<32x16xf32>
    %6 = arith.addf %3, %5 : vector<32x16xf32>
    %c0_6 = arith.constant 0 : index
    %c0_7 = arith.constant 0 : index
    %c0_8 = arith.constant 0 : index
    %7 = vector.load %arg3[%c0_6, %c0_7, %c0_8] : memref<1x32x16xf32, #tpu.memory_space<vmem>>, vector<1x32x16xf32>
    %8 = vector.shape_cast %7 : vector<1x32x16xf32> to vector<32x16xf32>
    %c0_9 = arith.constant 0 : index
    %c0_10 = arith.constant 0 : index
    %9 = vector.load %arg6[%c0_9, %c0_10] : memref<32x32xf32, #tpu.memory_space<vmem>>, vector<32x32xf32>
    %cst_11 = arith.constant dense<0.000000e+00> : vector<32x16xf32>
    %10 = tpu.matmul %9, %8, %cst_11 {dimension_numbers = #tpu.dot_dimension_numbers<[1], [0], [0], [1], [0, 0, 1, 1], [], []>} : vector<32x32xf32>, vector<32x16xf32>, vector<32x16xf32> -> vector<32x16xf32>
    %c0_12 = arith.constant 0 : index
    %c0_13 = arith.constant 0 : index
    %11 = vector.load %arg9[%c0_12, %c0_13] : memref<32x1xf32, #tpu.memory_space<vmem>>, vector<32x1xf32>
    %12 = vector.broadcast %11 : vector<32x1xf32> to vector<32x16xf32>
    %13 = arith.addf %10, %12 : vector<32x16xf32>
    %c0_14 = arith.constant 0 : index
    %c0_15 = arith.constant 0 : index
    %c0_16 = arith.constant 0 : index
    %14 = vector.load %arg4[%c0_14, %c0_15, %c0_16] : memref<1x32x16xf32, #tpu.memory_space<vmem>>, vector<1x32x16xf32>
    %15 = vector.shape_cast %14 : vector<1x32x16xf32> to vector<32x16xf32>
    %c0_17 = arith.constant 0 : index
    %c0_18 = arith.constant 0 : index
    %16 = vector.load %arg7[%c0_17, %c0_18] : memref<32x32xf32, #tpu.memory_space<vmem>>, vector<32x32xf32>
    %cst_19 = arith.constant dense<0.000000e+00> : vector<32x16xf32>
    %17 = tpu.matmul %16, %15, %cst_19 {dimension_numbers = #tpu.dot_dimension_numbers<[1], [0], [0], [1], [0, 0, 1, 1], [], []>} : vector<32x32xf32>, vector<32x16xf32>, vector<32x16xf32> -> vector<32x16xf32>
    %c0_20 = arith.constant 0 : index
    %c0_21 = arith.constant 0 : index
    %18 = vector.load %arg10[%c0_20, %c0_21] : memref<32x1xf32, #tpu.memory_space<vmem>>, vector<32x1xf32>
    %19 = vector.broadcast %18 : vector<32x1xf32> to vector<32x16xf32>
    %20 = arith.addf %17, %19 : vector<32x16xf32>
    %21 = vector.extract_strided_slice %6 {offsets = [0, 0], sizes = [8, 16], strides = [1, 1]} : vector<32x16xf32> to vector<8x16xf32>
    %22 = tpu.transpose %21, [1, 0] : vector<8x16xf32> -> vector<16x8xf32>
    %c0_22 = arith.constant 0 : index
    %c0_23 = arith.constant 0 : index
    %c0_24 = arith.constant 0 : index
    %c0_25 = arith.constant 0 : index
    %23 = vector.load %arg11[%c0_22, %c0_23, %c0_24, %c0_25] : memref<1x4x16x8xf32, #tpu.memory_space<vmem>>, vector<1x1x16x8xf32>
    %24 = vector.shape_cast %23 : vector<1x1x16x8xf32> to vector<16x8xf32>
    %25 = vector.shape_cast %22 : vector<16x8xf32> to vector<1x1x16x8xf32>
    tpu.vector_store %arg11[%c0_22, %c0_23, %c0_24, %c0_25], %25 {strides = array<i32>} : memref<1x4x16x8xf32, #tpu.memory_space<vmem>>, vector<1x1x16x8xf32>,
    %26 = vector.extract_strided_slice %13 {offsets = [0, 0], sizes = [8, 16], strides = [1, 1]} : vector<32x16xf32> to vector<8x16xf32>
    %c0_26 = arith.constant 0 : index
    %c0_27 = arith.constant 0 : index
    %c0_28 = arith.constant 0 : index
    %c0_29 = arith.constant 0 : index
    %27 = vector.load %arg12[%c0_26, %c0_27, %c0_28, %c0_29] : memref<1x4x8x16xf32, #tpu.memory_space<vmem>>, vector<1x1x8x16xf32>
    %28 = vector.shape_cast %27 : vector<1x1x8x16xf32> to vector<8x16xf32>
    %29 = vector.shape_cast %26 : vector<8x16xf32> to vector<1x1x8x16xf32>
    tpu.vector_store %arg12[%c0_26, %c0_27, %c0_28, %c0_29], %29 {strides = array<i32>} : memref<1x4x8x16xf32, #tpu.memory_space<vmem>>, vector<1x1x8x16xf32>,
    %30 = vector.extract_strided_slice %20 {offsets = [0, 0], sizes = [8, 16], strides = [1, 1]} : vector<32x16xf32> to vector<8x16xf32>
    %31 = tpu.transpose %30, [1, 0] : vector<8x16xf32> -> vector<16x8xf32>
    %c0_30 = arith.constant 0 : index
    %c0_31 = arith.constant 0 : index
    %c0_32 = arith.constant 0 : index
    %c0_33 = arith.constant 0 : index
    %32 = vector.load %arg13[%c0_30, %c0_31, %c0_32, %c0_33] : memref<1x4x16x8xf32, #tpu.memory_space<vmem>>, vector<1x1x16x8xf32>
    %33 = vector.shape_cast %32 : vector<1x1x16x8xf32> to vector<16x8xf32>
    %34 = vector.shape_cast %31 : vector<16x8xf32> to vector<1x1x16x8xf32>
    tpu.vector_store %arg13[%c0_30, %c0_31, %c0_32, %c0_33], %34 {strides = array<i32>} : memref<1x4x16x8xf32, #tpu.memory_space<vmem>>, vector<1x1x16x8xf32>,
    %35 = vector.extract_strided_slice %6 {offsets = [8, 0], sizes = [8, 16], strides = [1, 1]} : vector<32x16xf32> to vector<8x16xf32>
    %36 = tpu.transpose %35, [1, 0] : vector<8x16xf32> -> vector<16x8xf32>
    %c0_34 = arith.constant 0 : index
    %c1 = arith.constant 1 : index
    %c0_35 = arith.constant 0 : index
    %c0_36 = arith.constant 0 : index
    %37 = vector.load %arg11[%c0_34, %c1, %c0_35, %c0_36] : memref<1x4x16x8xf32, #tpu.memory_space<vmem>>, vector<1x1x16x8xf32>
    %38 = vector.shape_cast %37 : vector<1x1x16x8xf32> to vector<16x8xf32>
    %39 = vector.shape_cast %36 : vector<16x8xf32> to vector<1x1x16x8xf32>
    tpu.vector_store %arg11[%c0_34, %c1, %c0_35, %c0_36], %39 {strides = array<i32>} : memref<1x4x16x8xf32, #tpu.memory_space<vmem>>, vector<1x1x16x8xf32>,
    %40 = vector.extract_strided_slice %13 {offsets = [8, 0], sizes = [8, 16], strides = [1, 1]} : vector<32x16xf32> to vector<8x16xf32>
    %c0_37 = arith.constant 0 : index
    %c1_38 = arith.constant 1 : index
    %c0_39 = arith.constant 0 : index
    %c0_40 = arith.constant 0 : index
    %41 = vector.load %arg12[%c0_37, %c1_38, %c0_39, %c0_40] : memref<1x4x8x16xf32, #tpu.memory_space<vmem>>, vector<1x1x8x16xf32>
    %42 = vector.shape_cast %41 : vector<1x1x8x16xf32> to vector<8x16xf32>
    %43 = vector.shape_cast %40 : vector<8x16xf32> to vector<1x1x8x16xf32>
    tpu.vector_store %arg12[%c0_37, %c1_38, %c0_39, %c0_40], %43 {strides = array<i32>} : memref<1x4x8x16xf32, #tpu.memory_space<vmem>>, vector<1x1x8x16xf32>,
    %44 = vector.extract_strided_slice %20 {offsets = [8, 0], sizes = [8, 16], strides = [1, 1]} : vector<32x16xf32> to vector<8x16xf32>
    %45 = tpu.transpose %44, [1, 0] : vector<8x16xf32> -> vector<16x8xf32>
    %c0_41 = arith.constant 0 : index
    %c1_42 = arith.constant 1 : index
    %c0_43 = arith.constant 0 : index
    %c0_44 = arith.constant 0 : index
    %46 = vector.load %arg13[%c0_41, %c1_42, %c0_43, %c0_44] : memref<1x4x16x8xf32, #tpu.memory_space<vmem>>, vector<1x1x16x8xf32>
    %47 = vector.shape_cast %46 : vector<1x1x16x8xf32> to vector<16x8xf32>
    %48 = vector.shape_cast %45 : vector<16x8xf32> to vector<1x1x16x8xf32>
    tpu.vector_store %arg13[%c0_41, %c1_42, %c0_43, %c0_44], %48 {strides = array<i32>} : memref<1x4x16x8xf32, #tpu.memory_space<vmem>>, vector<1x1x16x8xf32>,
    %49 = vector.extract_strided_slice %6 {offsets = [16, 0], sizes = [8, 16], strides = [1, 1]} : vector<32x16xf32> to vector<8x16xf32>
    %50 = tpu.transpose %49, [1, 0] : vector<8x16xf32> -> vector<16x8xf32>
    %c0_45 = arith.constant 0 : index
    %c2 = arith.constant 2 : index
    %c0_46 = arith.constant 0 : index
    %c0_47 = arith.constant 0 : index
    %51 = vector.load %arg11[%c0_45, %c2, %c0_46, %c0_47] : memref<1x4x16x8xf32, #tpu.memory_space<vmem>>, vector<1x1x16x8xf32>
    %52 = vector.shape_cast %51 : vector<1x1x16x8xf32> to vector<16x8xf32>
    %53 = vector.shape_cast %50 : vector<16x8xf32> to vector<1x1x16x8xf32>
    tpu.vector_store %arg11[%c0_45, %c2, %c0_46, %c0_47], %53 {strides = array<i32>} : memref<1x4x16x8xf32, #tpu.memory_space<vmem>>, vector<1x1x16x8xf32>,
    %54 = vector.extract_strided_slice %13 {offsets = [16, 0], sizes = [8, 16], strides = [1, 1]} : vector<32x16xf32> to vector<8x16xf32>
    %c0_48 = arith.constant 0 : index
    %c2_49 = arith.constant 2 : index
    %c0_50 = arith.constant 0 : index
    %c0_51 = arith.constant 0 : index
    %55 = vector.load %arg12[%c0_48, %c2_49, %c0_50, %c0_51] : memref<1x4x8x16xf32, #tpu.memory_space<vmem>>, vector<1x1x8x16xf32>
    %56 = vector.shape_cast %55 : vector<1x1x8x16xf32> to vector<8x16xf32>
    %57 = vector.shape_cast %54 : vector<8x16xf32> to vector<1x1x8x16xf32>
    tpu.vector_store %arg12[%c0_48, %c2_49, %c0_50, %c0_51], %57 {strides = array<i32>} : memref<1x4x8x16xf32, #tpu.memory_space<vmem>>, vector<1x1x8x16xf32>,
    %58 = vector.extract_strided_slice %20 {offsets = [16, 0], sizes = [8, 16], strides = [1, 1]} : vector<32x16xf32> to vector<8x16xf32>
    %59 = tpu.transpose %58, [1, 0] : vector<8x16xf32> -> vector<16x8xf32>
    %c0_52 = arith.constant 0 : index
    %c2_53 = arith.constant 2 : index
    %c0_54 = arith.constant 0 : index
    %c0_55 = arith.constant 0 : index
    %60 = vector.load %arg13[%c0_52, %c2_53, %c0_54, %c0_55] : memref<1x4x16x8xf32, #tpu.memory_space<vmem>>, vector<1x1x16x8xf32>
    %61 = vector.shape_cast %60 : vector<1x1x16x8xf32> to vector<16x8xf32>
    %62 = vector.shape_cast %59 : vector<16x8xf32> to vector<1x1x16x8xf32>
    tpu.vector_store %arg13[%c0_52, %c2_53, %c0_54, %c0_55], %62 {strides = array<i32>} : memref<1x4x16x8xf32, #tpu.memory_space<vmem>>, vector<1x1x16x8xf32>,
    %63 = vector.extract_strided_slice %6 {offsets = [24, 0], sizes = [8, 16], strides = [1, 1]} : vector<32x16xf32> to vector<8x16xf32>
    %64 = tpu.transpose %63, [1, 0] : vector<8x16xf32> -> vector<16x8xf32>
    %c0_56 = arith.constant 0 : index
    %c3 = arith.constant 3 : index
    %c0_57 = arith.constant 0 : index
    %c0_58 = arith.constant 0 : index
    %65 = vector.load %arg11[%c0_56, %c3, %c0_57, %c0_58] : memref<1x4x16x8xf32, #tpu.memory_space<vmem>>, vector<1x1x16x8xf32>
    %66 = vector.shape_cast %65 : vector<1x1x16x8xf32> to vector<16x8xf32>
    %67 = vector.shape_cast %64 : vector<16x8xf32> to vector<1x1x16x8xf32>
    tpu.vector_store %arg11[%c0_56, %c3, %c0_57, %c0_58], %67 {strides = array<i32>} : memref<1x4x16x8xf32, #tpu.memory_space<vmem>>, vector<1x1x16x8xf32>,
    %68 = vector.extract_strided_slice %13 {offsets = [24, 0], sizes = [8, 16], strides = [1, 1]} : vector<32x16xf32> to vector<8x16xf32>
    %c0_59 = arith.constant 0 : index
    %c3_60 = arith.constant 3 : index
    %c0_61 = arith.constant 0 : index
    %c0_62 = arith.constant 0 : index
    %69 = vector.load %arg12[%c0_59, %c3_60, %c0_61, %c0_62] : memref<1x4x8x16xf32, #tpu.memory_space<vmem>>, vector<1x1x8x16xf32>
    %70 = vector.shape_cast %69 : vector<1x1x8x16xf32> to vector<8x16xf32>
    %71 = vector.shape_cast %68 : vector<8x16xf32> to vector<1x1x8x16xf32>
    tpu.vector_store %arg12[%c0_59, %c3_60, %c0_61, %c0_62], %71 {strides = array<i32>} : memref<1x4x8x16xf32, #tpu.memory_space<vmem>>, vector<1x1x8x16xf32>,
    %72 = vector.extract_strided_slice %20 {offsets = [24, 0], sizes = [8, 16], strides = [1, 1]} : vector<32x16xf32> to vector<8x16xf32>
    %73 = tpu.transpose %72, [1, 0] : vector<8x16xf32> -> vector<16x8xf32>
    %c0_63 = arith.constant 0 : index
    %c3_64 = arith.constant 3 : index
    %c0_65 = arith.constant 0 : index
    %c0_66 = arith.constant 0 : index
    %74 = vector.load %arg13[%c0_63, %c3_64, %c0_65, %c0_66] : memref<1x4x16x8xf32, #tpu.memory_space<vmem>>, vector<1x1x16x8xf32>
    %75 = vector.shape_cast %74 : vector<1x1x16x8xf32> to vector<16x8xf32>
    %76 = vector.shape_cast %73 : vector<16x8xf32> to vector<1x1x16x8xf32>
    tpu.vector_store %arg13[%c0_63, %c3_64, %c0_65, %c0_66], %76 {strides = array<i32>} : memref<1x4x16x8xf32, #tpu.memory_space<vmem>>, vector<1x1x16x8xf32>,
    return
  }
  func.func @transform_0(%arg0: i32, %arg1: i32) -> (i32, i32, i32) {
    %c0_i32 = arith.constant 0 : i32
    %c0_i32_0 = arith.constant 0 : i32
    return %arg0, %c0_i32, %arg1 : i32, i32, i32
  }
  func.func @transform_1(%arg0: i32, %arg1: i32) -> (i32, i32, i32) {
    %c0_i32 = arith.constant 0 : i32
    %c0_i32_0 = arith.constant 0 : i32
    return %arg0, %c0_i32, %arg1 : i32, i32, i32
  }
  func.func @transform_2(%arg0: i32, %arg1: i32) -> (i32, i32, i32) {
    %c0_i32 = arith.constant 0 : i32
    %c0_i32_0 = arith.constant 0 : i32
    return %arg0, %c0_i32, %arg1 : i32, i32, i32
  }
  func.func @transform_3(%arg0: i32, %arg1: i32) -> (i32, i32) {
    %c0_i32 = arith.constant 0 : i32
    %c0_i32_0 = arith.constant 0 : i32
    %c0_i32_1 = arith.constant 0 : i32
    return %c0_i32, %c0_i32_0 : i32, i32
  }
  func.func @transform_4(%arg0: i32, %arg1: i32) -> (i32, i32) {
    %c0_i32 = arith.constant 0 : i32
    %c0_i32_0 = arith.constant 0 : i32
    %c0_i32_1 = arith.constant 0 : i32
    return %c0_i32, %c0_i32_0 : i32, i32
  }
  func.func @transform_5(%arg0: i32, %arg1: i32) -> (i32, i32) {
    %c0_i32 = arith.constant 0 : i32
    %c0_i32_0 = arith.constant 0 : i32
    %c0_i32_1 = arith.constant 0 : i32
    return %c0_i32, %c0_i32_0 : i32, i32
  }
  func.func @transform_6(%arg0: i32, %arg1: i32) -> (i32, i32) {
    %c0_i32 = arith.constant 0 : i32
    %c0_i32_0 = arith.constant 0 : i32
    %c0_i32_1 = arith.constant 0 : i32
    return %c0_i32, %c0_i32_0 : i32, i32
  }
  func.func @transform_7(%arg0: i32, %arg1: i32) -> (i32, i32) {
    %c0_i32 = arith.constant 0 : i32
    %c0_i32_0 = arith.constant 0 : i32
    %c0_i32_1 = arith.constant 0 : i32
    return %c0_i32, %c0_i32_0 : i32, i32
  }
  func.func @transform_8(%arg0: i32, %arg1: i32) -> (i32, i32) {
    %c0_i32 = arith.constant 0 : i32
    %c0_i32_0 = arith.constant 0 : i32
    %c0_i32_1 = arith.constant 0 : i32
    return %c0_i32, %c0_i32_0 : i32, i32
  }
  func.func @transform_9(%arg0: i32, %arg1: i32) -> (i32, i32, i32, i32) {
    %c0_i32 = arith.constant 0 : i32
    %c0_i32_0 = arith.constant 0 : i32
    %c0_i32_1 = arith.constant 0 : i32
    return %arg0, %c0_i32, %arg1, %c0_i32_0 : i32, i32, i32, i32
  }
  func.func @transform_10(%arg0: i32, %arg1: i32) -> (i32, i32, i32, i32) {
    %c0_i32 = arith.constant 0 : i32
    %c0_i32_0 = arith.constant 0 : i32
    %c0_i32_1 = arith.constant 0 : i32
    return %arg0, %c0_i32, %c0_i32_0, %arg1 : i32, i32, i32, i32
  }
  func.func @transform_11(%arg0: i32, %arg1: i32) -> (i32, i32, i32, i32) {
    %c0_i32 = arith.constant 0 : i32
    %c0_i32_0 = arith.constant 0 : i32
    %c0_i32_1 = arith.constant 0 : i32
    return %arg0, %c0_i32, %arg1, %c0_i32_0 : i32, i32, i32, i32
  }
}

</mosaic_0001>

<bundles_post_ra>
// kernel: tpu_custom_call.1
= control target key start
LH: loop header
LB: loop body
LE: loop exit
PB: predicated region body
PF: predicated region fallthrough
CT: control target
= control target key end

     0   :  { %s3019_s0 = inlined_call_operand.hbm [shape: f32[2,32,16], index: 0, kind: input, shape index: {}]   ;;  %s3020_s1 = inlined_call_operand.hbm [shape: f32[2,32,16], index: 1, kind: input, shape index: {}]   ;;  %s3021_s2 = inlined_call_operand.hbm [shape: f32[2,32,16], index: 2, kind: input, shape index: {}]   ;;  %s3022_s3 = inlined_call_operand.hbm [shape: f32[32,32], index: 3, kind: input, shape index: {}]   ;;  %s3023_s4 = inlined_call_operand.hbm [shape: f32[32,32], index: 4, kind: input, shape index: {}]   ;;  %s3024_s5 = inlined_call_operand.hbm [shape: f32[32,32], index: 5, kind: input, shape index: {}]   ;;  %s3025_s6 = inlined_call_operand.hbm [shape: f32[32,1], index: 6, kind: input, shape index: {}]   ;;  %s3026_s7 = inlined_call_operand.hbm [shape: f32[32,1], index: 7, kind: input, shape index: {}]   ;;  %s3027_s8 = inlined_call_operand.hbm [shape: f32[32,1], index: 8, kind: input, shape index: {}]   ;;  %s3028_s9 = inlined_call_operand.hbm [shape: f32[2,4,16,8], index: 9, kind: output, shape index: {0}]   ;;  %s3029_s10 = inlined_call_operand.hbm [shape: f32[2,4,8,16], index: 10, kind: output, shape index: {1}]   ;;  %s3030_s11 = inlined_call_operand.hbm [shape: f32[2,4,16,8], index: 11, kind: output, shape index: {2}]  }
   0x1   :  { %3062 = sst [smem:[#allocation37_spill]] %s3020_s1 }
   0x2   :  { %3063 = sst [smem:[#allocation38_spill]] %s3022_s3 }
   0x3   :  { %3064 = sst [smem:[#allocation39_spill]] %s3024_s5 }
   0x4   :  { %3065 = sst [smem:[#allocation40_spill]] %s3026_s7 }
   0x5   :  { %3066 = sst [smem:[#allocation41_spill]] %s3028_s9 }
   0x6   :  { %3067 = sst [smem:[#allocation42_spill]] %s3029_s10 }
   0x7   :  { %3068 = sst [smem:[#allocation43_spill]] %s3030_s11 }
   0x8   :  { %17 = vsyncpa [#allocation3], 0 }
   0x9   :  { %19 = vsyncpa [#allocation3 + $0x1], 0 }
   0xa   :  { %20 = vsyncpa [#allocation6], 0 }
   0xb   :  { %22 = vsyncpa [#allocation6 + $0x1], 0 }
   0xc   :  { %23 = vsyncpa [#allocation9], 0 }
   0xd   :  { %24 = vsyncpa [#allocation12], 0 }
   0xe   :  { %25 = vsyncpa [#allocation15], 0 }
   0xf   :  { %26 = vsyncpa [#allocation4], 0 }
  0x10   :  { %28 = vsyncpa [#allocation4 + $0x1], 0 }
  0x11   :  { %29 = vsyncpa [#allocation19], 0 }
  0x12   :  { %31 = vsyncpa [#allocation19 + $0x1], 0  ;;  %s2424_s17 = smov 0   ;;  %s2426_s18 = smov 0  }
  0x13   :  { %s2428_s19 = smov 0   ;;  %s2430_s20 = smov 0  }
  0x14   :  { %s2432_s21 = smov 0   ;;  %s2434_s22 = smov 0  }
  0x15 LB: > { %3069 = sst [smem:[#allocation28_spill]] %s2325_s17  ;;  %s2455_s23 = sadd.s32 4294967295, %s2345_s22   ;;  %s2345_s22 = sphi %s2434_s22, %s37_s22   ;;  %s2341_s21 = sphi %s2432_s21, %s3122_s21   ;;  %s2337_s20 = sphi %s2430_s20, %s3121_s20   ;;  %s2333_s19 = sphi %s2428_s19, %s3125_s19   ;;  %s2329_s18 = sphi %s2426_s18, %s3124_s18   ;;  %s2325_s17 = sphi %s2424_s17, %s3123_s17  }
  0x16   : > { %3070 = sst [smem:[#allocation29_spill]] %s2337_s20  ;;  %p1610_p0 = scmp.ge.s32.totalorder %s2345_s22, 1 }
  0x17   : > { %3071 = sst [smem:[#allocation30_spill]] %s2341_s21  ;;  %p3036_p1 = scmp.eq.s32.totalorder %s2455_s23, 0 }
  0x18   : > { %3072 = sst [smem:[#allocation31_spill]] %s2345_s22  ;;  %p348_p2 = scmp.lt.s32.totalorder %s2345_s22, 3 }
  0x19   : > { %s2347_s25 = smov [#allocation8]   ;;  %s2348_s28 = smov [#allocation11]  }
  0x1a   : > { %p2460_p3 = pnand %p1610_p0, %p348_p2  ;;  %s360_s26 = sshll.u32 %s2347_s25, 4  ;;  %s2464_s26 = int_to_ptr.vmem [resolvable:$true] %s360_s26 }
  0x1b   : > { %s386_s29 = sshll.u32 %s2348_s28, 4  ;;  %s2349_s30 = smov [#allocation14]   ;;  %s2475_s29 = int_to_ptr.vmem [resolvable:$true] %s386_s29 }
  0x1c   : > { %s3073_s24 = scalar_select %p2460_p3, 1, 0 }
  0x1d   : > { %p1814_p4 = pneg %p2460_p3  ;;  %s2477_s12 = sshll.u32 %s2349_s30, 4  ;;  %s413_s12 = int_to_ptr.vmem [resolvable:$true] %s2477_s12 }
  0x1e   : > { %3074 = sst [smem:[#allocation32_spill]] %s3073_s24  ;;  %s3076_s3 = sld [smem:[#allocation38_spill]] }
  0x1f   : > { %p2471_p6 = pnand %p1814_p4, %p3036_p1 }
  0x21   : > { %s3075_s27 = scalar_select %p2471_p6, 1, 0 }
  0x22   : > { %p2487_p8 = pneg %p2471_p6 }
  0x24   : > { %s1929_s15 = scalar_lea.hbm %s3076_s3, 512 }
  0x25   : > { %p1930_p7 = scmp.ne.s32.totalorder %s3076_s3, %s1929_s15  ;;  %p1936_p11 = scmp.lt.u32.totalorder %s1929_s15, %s3076_s3 }
  0x26   : > { %s3077_s9 = scalar_select %p2487_p8, 1, 0 }
  0x27   : > { %p1932_p9 = pnand %p2487_p8, %p1930_p7 }
  0x29   : > { %p1933_p10 = pneg %p1932_p9 }
  0x2b   : > { %p1938_p12 = pnand %p1936_p11, %p1933_p10 }
  0x2d   : > { %1941 = shalt.err (!%p1938_p12)
}
  0x2e   : > { %s1942_s13 = scalar_lea.vmem %s2464_s26, 512  ;;  %p1950_p4 = scmp.lt.s32.totalorder %s2464_s26, %s2464_s26 }
  0x2f   : > { %p1943_p13 = scmp.ne.s32.totalorder %s2464_s26, %s1942_s13  ;;  %p1951_p5 = scmp.lt.s32.totalorder %s1942_s13, %s1942_s13 }
  0x31   : > { %p1945_p0 = pnand %p1943_p13, %p2487_p8  ;;  %p1952_p7 = por %p1951_p5, %p1950_p4 }
  0x33   : > { %p1946_p2 = pneg %p1945_p0 }
  0x35   : > { %p1953_p9 = pnand %p1952_p7, %p1946_p2 }
  0x37   : > { %1956 = shalt.err (!%p1953_p9)
}
  0x38   : > { %s3039_s14 = smov 128   ;;  %s3041_s15 = smov 8  }
  0x39   : > { %1817 = dma.hbm_to_vmem [thread:$0]  (!%p2471_p6), %s3076_s3, 512, %s2464_s26, [#allocation9], %s3039_s14, %s3039_s14, %s3041_s15  }
  0x3a   : > { %s3078_s5 = sld [smem:[#allocation39_spill]] }
  0x40   : > { %s1957_s13 = scalar_lea.hbm %s3078_s5, 512 }
  0x41   : > { %p1958_p5 = scmp.ne.s32.totalorder %s3078_s5, %s1957_s13  ;;  %p1964_p12 = scmp.lt.u32.totalorder %s1957_s13, %s3078_s5 }
  0x43   : > { %p1960_p10 = pnand %p1958_p5, %p2487_p8 }
  0x45   : > { %p1961_p11 = pneg %p1960_p10 }
  0x47   : > { %p1966_p13 = pnand %p1964_p12, %p1961_p11 }
  0x49   : > { %1969 = shalt.err (!%p1966_p13)
}
  0x4a   : > { %s1970_s26 = scalar_lea.vmem %s2475_s29, 512  ;;  %p1978_p7 = scmp.lt.s32.totalorder %s2475_s29, %s2475_s29 }
  0x4b   : > { %p1971_p0 = scmp.ne.s32.totalorder %s2475_s29, %s1970_s26  ;;  %p1979_p9 = scmp.lt.s32.totalorder %s1970_s26, %s1970_s26 }
  0x4d   : > { %p1973_p2 = pnand %p1971_p0, %p2487_p8  ;;  %p1980_p5 = por %p1979_p9, %p1978_p7 }
  0x4f   : > { %p1974_p4 = pneg %p1973_p2 }
  0x51   : > { %p1981_p10 = pnand %p1980_p5, %p1974_p4 }
  0x53   : > { %1984 = shalt.err (!%p1981_p10)
}
  0x54   : > { %1823 = dma.hbm_to_vmem [thread:$0]  (!%p2471_p6), %s3078_s5, 512, %s2475_s29, [#allocation12], %s3039_s14, %s3039_s14, %s3041_s15  }
  0x55   : > { %s3079_s7 = sld [smem:[#allocation40_spill]] }
  0x5b   : > { %s1985_s16 = scalar_lea.hbm %s3079_s7, 512 }
  0x5c   : > { %p1986_p11 = scmp.ne.s32.totalorder %s3079_s7, %s1985_s16  ;;  %p1992_p0 = scmp.lt.u32.totalorder %s1985_s16, %s3079_s7 }
  0x5e   : > { %p1988_p12 = pnand %p1986_p11, %p2487_p8 }
  0x60   : > { %p1989_p13 = pneg %p1988_p12 }
  0x62   : > { %p1994_p2 = pnand %p1992_p0, %p1989_p13 }
  0x64   : > { %1997 = shalt.err (!%p1994_p2)
}
  0x65   : > { %s1998_s26 = scalar_lea.vmem %s413_s12, 512  ;;  %p2006_p5 = scmp.lt.s32.totalorder %s413_s12, %s413_s12 }
  0x66   : > { %p1999_p4 = scmp.ne.s32.totalorder %s413_s12, %s1998_s26  ;;  %p2007_p10 = scmp.lt.s32.totalorder %s1998_s26, %s1998_s26 }
  0x68   : > { %p2001_p7 = pnand %p1999_p4, %p2487_p8  ;;  %p2008_p1 = por %p2007_p10, %p2006_p5 }
  0x6a   : > { %p2002_p9 = pneg %p2001_p7 }
  0x6c   : > { %p2009_p3 = pnand %p2008_p1, %p2002_p9 }
  0x6e   : > { %2012 = shalt.err (!%p2009_p3)
}
  0x6f   : > { %1829 = dma.hbm_to_vmem [thread:$0]  (!%p2471_p6), %s3079_s7, 512, %s413_s12, [#allocation15], %s3039_s14, %s3039_s14, %s3041_s15  }
  0x70   : > { %s3038_s11 = sadd.s32 4294967294, %s2345_s22   ;;  %s49_s20 = sadd.s32 1, %s2341_s21 }
  0x71   : > { %s58_s24 = sadd.s32 1, %s2333_s19  ;;  %p51_p1 = scmp.ge.s32.totalorder %s49_s20, 2 }
  0x72   : > { %p65_p3 = scmp.ne.s32.totalorder %s2333_s19, %s2329_s18  ;;  %p66_p11 = scmp.eq.s32.totalorder %s2345_s22, 0 }
  0x73   : > { %p71_p12 = scmp.ne.s32.totalorder %s2329_s18, %s2325_s17  ;;  %s3127_s20 = smov (%p51_p1, %s49_s20), 0 }
  0x74   : > { %3080 = sst [smem:[#allocation33_spill]] %s3127_s20  ;;  %p2569_p13 = por %p66_p11, %p65_p3 }
  0x75   : > { %p3082_p0 = scmp.eq.s32.totalorder %s2455_s23, 0  ;;  %s53_s25 = ssub.s32 %s2341_s21, %s3127_s20 }
  0x76   : > { %p279_p4 = scmp.eq.s32.totalorder %s2455_s23, 1  ;;  %p56_p7 = scmp.eq.s32.totalorder %s53_s25, 0 }
  0x77   : > { %p2575_p2 = por %p3082_p0, %p71_p12  ;;  %p285_p9 = scmp.eq.s32.totalorder %s3038_s11, 1 }
  0x78   : > { %p2584_p5 = por %p279_p4, %p65_p3  ;;  %p1859_p10 = scmp.lt.s32.totalorder %s2345_s22, 2 }
  0x79   : > { %s3083_s12 = scalar_select %p2575_p2, 1, 0 }
  0x7a   : > { %s3084_s28 = scalar_select %p2584_p5, 1, 0 }
  0x7b   : > { %s2590_s30 = scalar_select %p56_p7, %s2333_s19, %s58_s24  }
  0x7c   : > { %3085 = sst [smem:[#allocation34_spill]] %s3084_s28  ;;  %p2592_p1 = por %p285_p9, %p71_p12 }
  0x7d   : > { %3086 = sst [smem:[#allocation35_spill]] %s2590_s30  ;;  %s3043_s26 = sand.u32 1, %s2333_s19  }
  0x7e   : > { %s3087_s13 = scalar_select %p2592_p1, 1, 0 }
  0x7f   : > { %s2599_s29 = sshll.u32 %s3043_s26, 5  ;;  %s2602_s10 = sshll.u32 %s2341_s21, 9 }
  0x80   : > { %3088 = sst [smem:[#allocation36_spill]] %s3087_s13  ;;  %p2606_p3 = pnand %p1859_p10, %p2569_p13 }
  0x81   : > { %s461_s24 = sand.u32 1, %s2345_s22   ;;  %s3090_s1 = sld [smem:[#allocation37_spill]] }
  0x82   : > { %s3089_s25 = scalar_select %p2606_p3, 1, 0 }
  0x83   : > { %s465_s26 = scalar_lea.vmem [#allocation5], %s2599_s29  ;;  %s2352_s16 = smov [#allocation10]  }
  0x84   : > { %s473_s3 = sshll.u32 %s465_s26, 4  ;;  %s2620_s5 = sshll.u32 %s2352_s16, 4  ;;  %s2618_s3 = int_to_ptr.vmem [resolvable:$true] %s473_s3  ;;  %s374_s5 = int_to_ptr.vmem [resolvable:$true] %s2620_s5 }
  0x85   : > { %s2622_s7 = scalar_lea.sflag [#allocation6], %s461_s24  ;;  %p2628_p12 = pneg %p2606_p3 }
  0x87   : > { %s2615_s15 = scalar_lea.hbm %s3090_s1, %s2602_s10  ;;  %s2018_s21 = scalar_lea.hbm %s3090_s1, 1024 }
  0x88   : > { %s2013_s20 = scalar_lea.hbm %s2615_s15, 512  ;;  %p2019_p4 = scmp.lt.u32.totalorder %s2615_s15, %s3090_s1 }
  0x89   : > { %p2014_p11 = scmp.ne.s32.totalorder %s2615_s15, %s2013_s20  ;;  %p2020_p7 = scmp.lt.u32.totalorder %s2018_s21, %s2013_s20 }
  0x8a   : > { %s3091_s14 = scalar_select %p2628_p12, 1, 0 }
  0x8b   : > { %p2016_p13 = pnand %p2628_p12, %p2014_p11  ;;  %p2021_p9 = por %p2020_p7, %p2019_p4 }
  0x8c   : > { %p2022_p10 = scmp.lt.u32.totalorder %s2013_s20, %s2615_s15 }
  0x8d   : > { %p2017_p0 = pneg %p2016_p13 }
  0x8e   : > { %p2023_p1 = por %p2022_p10, %p2021_p9 }
  0x90   : > { %p2024_p5 = pnand %p2023_p1, %p2017_p0 }
  0x92   : > { %2027 = shalt.err (!%p2024_p5)
}
  0x93   : > { %s2028_s24 = scalar_lea.vmem %s2618_s3, 512  ;;  %s2353_s11 = smov [#allocation5]  }
  0x94   : > { %p2029_p11 = scmp.ne.s32.totalorder %s2618_s3, %s2028_s24  ;;  %s2033_s26 = sshll.u32 %s2353_s11, 4  ;;  %s2034_s26 = int_to_ptr.vmem [resolvable:$false] %s2033_s26 }
  0x95   : > { %s2035_s30 = scalar_lea.vmem %s2034_s26, 1024  ;;  %p2036_p6 = scmp.lt.s32.totalorder %s2618_s3, %s2034_s26 }
  0x96   : > { %p2031_p13 = pnand %p2029_p11, %p2628_p12  ;;  %p2037_p8 = scmp.lt.s32.totalorder %s2035_s30, %s2028_s24 }
  0x98   : > { %p2032_p2 = pneg %p2031_p13  ;;  %p2038_p4 = por %p2037_p8, %p2036_p6 }
  0x9a   : > { %p2039_p7 = pnand %p2038_p4, %p2032_p2 }
  0x9c   : > { %2042 = shalt.err (!%p2039_p7)
}
  0x9d   : > { %s3092_s21 = smov 8   ;;  %s3093_s20 = smov 128  }
  0x9e   : > { %1839 = dma.hbm_to_vmem [thread:$0]  (!%p2606_p3), %s2615_s15, 512, %s2618_s3, %s2622_s7, %s3093_s20, %s3093_s20, %s3092_s21  }
  0x9f   : > { %s2043_s26 = scalar_lea.hbm %s3023_s4, 512  ;;  %p3094_p8 = scmp.ne.s32.totalorder %s3077_s9, 0 }
  0xa0   : > { %p2044_p6 = scmp.ne.s32.totalorder %s3023_s4, %s2043_s26  ;;  %p2050_p1 = scmp.lt.u32.totalorder %s2043_s26, %s3023_s4 }
  0xa2   : > { %p2046_p2 = pnand %p2044_p6, %p3094_p8 }
  0xa4   : > { %p2047_p5 = pneg %p2046_p2 }
  0xa6   : > { %p2052_p0 = pnand %p2050_p1, %p2047_p5 }
  0xa8   : > { %2055 = shalt.err (!%p2052_p0)
}
  0xa9   : > { %s2056_s13 = scalar_lea.vmem %s374_s5, 512  ;;  %p2064_p13 = scmp.lt.s32.totalorder %s374_s5, %s374_s5 }
  0xaa   : > { %p2057_p9 = scmp.ne.s32.totalorder %s374_s5, %s2056_s13  ;;  %p2065_p4 = scmp.lt.s32.totalorder %s2056_s13, %s2056_s13 }
  0xac   : > { %p2059_p10 = pnand %p2057_p9, %p3094_p8  ;;  %p2066_p7 = por %p2065_p4, %p2064_p13 }
  0xae   : > { %p2060_p11 = pneg %p2059_p10 }
  0xb0   : > { %p2067_p3 = pnand %p2066_p7, %p2060_p11 }
  0xb2   : > { %2070 = shalt.err (!%p2067_p3)
}
  0xb3   : > { %p3095_p6 = scmp.ne.s32.totalorder %s3075_s27, 0  ;;  %s2354_s22 = smov [#allocation13]  }
  0xb4   : > { %s399_s15 = sshll.u32 %s2354_s22, 4  ;;  %s2355_s16 = smov [#allocation16]   ;;  %s400_s15 = int_to_ptr.vmem [resolvable:$true] %s399_s15 }
  0xb5   : > { %1820 = dma.hbm_to_vmem [thread:$0]  (!%p3095_p6), %s3023_s4, 512, %s374_s5, [#allocation9], %s3093_s20, %s3093_s20, %s3092_s21  }
  0xb6   : > { %s425_s11 = sshll.u32 %s2355_s16, 4  ;;  %s2071_s24 = scalar_lea.hbm %s3025_s6, 512  ;;  %s426_s11 = int_to_ptr.vmem [resolvable:$true] %s425_s11 }
  0xb7   : > { %p2072_p3 = scmp.ne.s32.totalorder %s3025_s6, %s2071_s24  ;;  %p2078_p1 = scmp.lt.u32.totalorder %s2071_s24, %s3025_s6 }
  0xb9   : > { %p2074_p2 = pnand %p2072_p3, %p3094_p8 }
  0xbb   : > { %p2075_p5 = pneg %p2074_p2 }
  0xbd   : > { %p2080_p0 = pnand %p2078_p1, %p2075_p5 }
  0xbf   : > { %2083 = shalt.err (!%p2080_p0)
}
  0xc0   : > { %s2084_s5 = scalar_lea.vmem %s400_s15, 512  ;;  %p2092_p13 = scmp.lt.s32.totalorder %s400_s15, %s400_s15 }
  0xc1   : > { %p2085_p9 = scmp.ne.s32.totalorder %s400_s15, %s2084_s5  ;;  %p2093_p4 = scmp.lt.s32.totalorder %s2084_s5, %s2084_s5 }
  0xc3   : > { %p2087_p10 = pnand %p2085_p9, %p3094_p8  ;;  %p2094_p7 = por %p2093_p4, %p2092_p13 }
  0xc5   : > { %p2088_p11 = pneg %p2087_p10 }
  0xc7   : > { %p2095_p12 = pnand %p2094_p7, %p2088_p11 }
  0xc9   : > { %2098 = shalt.err (!%p2095_p12)
}
  0xca   : > { %1826 = dma.hbm_to_vmem [thread:$0]  (!%p3095_p6), %s3025_s6, 512, %s400_s15, [#allocation12], %s3093_s20, %s3093_s20, %s3092_s21  }
  0xcb   : > { %s2099_s16 = scalar_lea.hbm %s3027_s8, 512 }
  0xcc   : > { %p2100_p3 = scmp.ne.s32.totalorder %s3027_s8, %s2099_s16  ;;  %p2106_p5 = scmp.lt.u32.totalorder %s2099_s16, %s3027_s8 }
  0xce   : > { %p2102_p12 = pnand %p2100_p3, %p3094_p8 }
  0xd0   : > { %p2103_p2 = pneg %p2102_p12 }
  0xd2   : > { %p2108_p1 = pnand %p2106_p5, %p2103_p2 }
  0xd4   : > { %2111 = shalt.err (!%p2108_p1)
}
  0xd5   : > { %s2112_s1 = scalar_lea.vmem %s426_s11, 512  ;;  %p2120_p11 = scmp.lt.s32.totalorder %s426_s11, %s426_s11 }
  0xd6   : > { %p2113_p0 = scmp.ne.s32.totalorder %s426_s11, %s2112_s1  ;;  %p2121_p13 = scmp.lt.s32.totalorder %s2112_s1, %s2112_s1 }
  0xd8   : > { %p2115_p9 = pnand %p2113_p0, %p3094_p8  ;;  %p2122_p4 = por %p2121_p13, %p2120_p11 }
  0xda   : > { %p2116_p10 = pneg %p2115_p9 }
  0xdc   : > { %p2123_p7 = pnand %p2122_p4, %p2116_p10 }
  0xde   : > { %2126 = shalt.err (!%p2123_p7)
}
  0xdf   : > { %1832 = dma.hbm_to_vmem [thread:$0]  (!%p3095_p6), %s3027_s8, 512, %s426_s11, [#allocation15], %s3093_s20, %s3093_s20, %s3092_s21  }
  0xe0   : > { %s2723_s28 = scalar_lea.hbm %s3019_s0, %s2602_s10  ;;  %s443_s27 = scalar_lea.vmem [#allocation2], %s2599_s29 }
  0xe1   : > { %s451_s3 = sshll.u32 %s443_s27, 4  ;;  %s2732_s26 = scalar_lea.hbm %s3021_s2, %s2602_s10  ;;  %s2726_s3 = int_to_ptr.vmem [resolvable:$true] %s451_s3 }
  0xe2   : > { %s3096_s13 = sand.u32 1, %s2333_s19   ;;  %s2127_s24 = scalar_lea.hbm %s2723_s28, 512 }
  0xe3   : > { %s2736_s11 = scalar_lea.sflag [#allocation3], %s3096_s13  ;;  %p2128_p8 = scmp.ne.s32.totalorder %s2723_s28, %s2127_s24 }
  0xe4   : > { %p3097_p6 = scmp.ne.s32.totalorder %s3091_s14, 0  ;;  %s2132_s15 = scalar_lea.hbm %s3019_s0, 1024 }
  0xe5   : > { %p2133_p2 = scmp.lt.u32.totalorder %s2723_s28, %s3019_s0  ;;  %p2134_p5 = scmp.lt.u32.totalorder %s2132_s15, %s2127_s24 }
  0xe6   : > { %p2130_p3 = pnand %p2128_p8, %p3097_p6  ;;  %p2136_p0 = scmp.lt.u32.totalorder %s2127_s24, %s2723_s28 }
  0xe7   : > { %p2135_p1 = por %p2134_p5, %p2133_p2 }
  0xe8   : > { %p2131_p12 = pneg %p2130_p3 }
  0xe9   : > { %p2137_p9 = por %p2136_p0, %p2135_p1 }
  0xeb   : > { %p2138_p10 = pnand %p2137_p9, %p2131_p12 }
  0xed   : > { %2141 = shalt.err (!%p2138_p10)
}
  0xee   : > { %s2142_s10 = scalar_lea.vmem %s2726_s3, 512  ;;  %s2356_s17 = smov [#allocation2]  }
  0xef   : > { %p2143_p11 = scmp.ne.s32.totalorder %s2726_s3, %s2142_s10  ;;  %s2147_s27 = sshll.u32 %s2356_s17, 4  ;;  %s2148_s27 = int_to_ptr.vmem [resolvable:$false] %s2147_s27 }
  0xf0   : > { %s2149_s22 = scalar_lea.vmem %s2148_s27, 1024  ;;  %p2150_p7 = scmp.lt.s32.totalorder %s2726_s3, %s2148_s27 }
  0xf1   : > { %p2145_p13 = pnand %p2143_p11, %p3097_p6  ;;  %p2151_p8 = scmp.lt.s32.totalorder %s2149_s22, %s2142_s10 }
  0xf3   : > { %p2146_p4 = pneg %p2145_p13  ;;  %p2152_p3 = por %p2151_p8, %p2150_p7 }
  0xf5   : > { %p2153_p2 = pnand %p2152_p3, %p2146_p4 }
  0xf7   : > { %2156 = shalt.err (!%p2153_p2)
}
  0xf8   : > { %p3098_p12 = scmp.ne.s32.totalorder %s3089_s25, 0  ;;  %s487_s16 = scalar_lea.vmem [#allocation7], %s2599_s29 }
  0xf9   : > { %s495_s13 = sshll.u32 %s487_s16, 4  ;;  %s2157_s24 = scalar_lea.hbm %s2732_s26, 512  ;;  %s2764_s13 = int_to_ptr.vmem [resolvable:$true] %s495_s13 }
  0xfa   : > { %1836 = dma.hbm_to_vmem [thread:$0]  (!%p3098_p12), %s2723_s28, 512, %s2726_s3, %s2736_s11, %s3093_s20, %s3093_s20, %s3092_s21  }
  0xfb   : > { %p2158_p5 = scmp.ne.s32.totalorder %s2732_s26, %s2157_s24  ;;  %s2162_s15 = scalar_lea.hbm %s3021_s2, 1024 }
  0xfc   : > { %p2163_p9 = scmp.lt.u32.totalorder %s2732_s26, %s3021_s2  ;;  %p2164_p10 = scmp.lt.u32.totalorder %s2162_s15, %s2157_s24 }
  0xfd   : > { %p2160_p1 = pnand %p2158_p5, %p3097_p6  ;;  %p2166_p13 = scmp.lt.u32.totalorder %s2157_s24, %s2732_s26 }
  0xfe   : > { %p2165_p11 = por %p2164_p10, %p2163_p9 }
  0xff   : > { %p2161_p0 = pneg %p2160_p1 }
 0x100   : > { %p2167_p4 = por %p2166_p13, %p2165_p11 }
 0x102   : > { %p2168_p7 = pnand %p2167_p4, %p2161_p0 }
 0x104   : > { %2171 = shalt.err (!%p2168_p7)
}
 0x105   : > { %s2172_s29 = scalar_lea.vmem %s2764_s13, 512  ;;  %s2357_s28 = smov [#allocation7]  }
 0x106   : > { %p2173_p8 = scmp.ne.s32.totalorder %s2764_s13, %s2172_s29  ;;  %s2177_s3 = sshll.u32 %s2357_s28, 4  ;;  %s2178_s3 = int_to_ptr.vmem [resolvable:$false] %s2177_s3 }
 0x107   : > { %s2179_s11 = scalar_lea.vmem %s2178_s3, 1024  ;;  %p2180_p5 = scmp.lt.s32.totalorder %s2764_s13, %s2178_s3 }
 0x108   : > { %p2175_p3 = pnand %p2173_p8, %p3097_p6  ;;  %p2181_p1 = scmp.lt.s32.totalorder %s2179_s11, %s2172_s29 }
 0x10a   : > { %p2176_p2 = pneg %p2175_p3  ;;  %p2182_p9 = por %p2181_p1, %p2180_p5 }
 0x10c   : > { %p2183_p10 = pnand %p2182_p9, %p2176_p2 }
 0x10e   : > { %2186 = shalt.err (!%p2183_p10)
}
 0x10f   : > { %1842 = dma.hbm_to_vmem [thread:$0]  (!%p3098_p12), %s2732_s26, 512, %s2764_s13, %s2622_s7, %s3093_s20, %s3093_s20, %s3092_s21  }
 0x110   : > { %s3099_s14 = sld [smem:[#allocation32_spill]] }
 0x116   : > { %p3100_p6 = scmp.ne.s32.totalorder %s3099_s14, 0 }
 0x117   : > { %s2794_s10 = sand.u32 (!%p3100_p6), 1, %s2329_s18   ;;  %p3101_p0 = scmp.ne.s32.totalorder (!%p3100_p6), %s3083_s12, 0 }
 0x118   : > { %507 = sbr.rel (%p3100_p6) target bundleno = 722 (0x2d2), region = 56  ;;  %s2797_s17 = sshll.u32 (!%p3100_p6), %s2794_s10, 5 }
 0x119   : > { %s510_s25 = scalar_lea.sflag (!%p3100_p6), [#allocation3], %s2794_s10  ;;  %s513_s27 = scalar_lea.vmem (!%p3100_p6), [#allocation2], %s2797_s17 }
 0x11f   : > { %2296 = dma.done.wait (%p3101_p0), %s510_s25, 512  }
 0x120   : > { %2298 = vsyncadd (%p3101_p0), %s510_s25, 4294966784  ;;  %s518_s7 = sand.u32 1, %s2455_s23   ;;  %s522_s20 = scalar_lea.vmem [#allocation5], %s2797_s17 }
 0x121   : > { %s519_s21 = scalar_lea.sflag [#allocation6], %s518_s7 }
 0x122   : > { %2300 = dma.done.wait (%p3101_p0), %s519_s21, 1024  }
 0x123   : > { %2302 = vsyncadd (%p3101_p0), %s519_s21, 4294966272  ;;  %s2814_s26 = scalar_lea.vmem [#allocation7], %s2797_s17  ;;  %p3102_p12 = scmp.eq.s32.totalorder %s2455_s23, 0 }
 0x125   : > { %2304 = dma.done.wait (%p3102_p12), [#allocation9], 1024   ;;  %p3103_p11 = pmov %p3102_p12 }
 0x127   : > { %2306 = vsyncadd (%p3103_p11), [#allocation9], 4294966272  ;;  %p3104_p13 = pmov %p3103_p11 }
 0x128   : > { %p3105_p4 = pmov %p3103_p11 }
 0x129   : > { %2308 = dma.done.wait (%p3104_p13), [#allocation12], 1024  }
 0x12a   : > { %2310 = vsyncadd (%p3105_p4), [#allocation12], 4294966272  ;;  %p3106_p7 = pmov %p3105_p4 }
 0x12b   : > { %p3107_p8 = pmov %p3105_p4 }
 0x12c   : > { %2312 = dma.done.wait (%p3106_p7), [#allocation15], 1024  }
 0x12d   : > { %2314 = vsyncadd (%p3107_p8), [#allocation15], 4294966272  ;;  %v2358_v0 = vmov 0   ;;  %v616_v1 = vld [vmem:[%s513_s27] sm:$0xff]  ;;  %v617_v2 = vld [vmem:[%s513_s27 + $0x8] sm:$0xff]  ;;  %vm648_vm0 = vcmask 261120  }
 0x12e   : > { %1927 = vset.pattern.permute.xlu0 %v2358_v0  ;;  %1928 = vset.pattern.permute.xlu1 %v2358_v0  ;;  %v746_v3 = vld [vmem:[%s522_s20] sm:$0xff]  ;;  %v1750_v4 = vpack.c.bf16 %v617_v2, %v616_v1  ;;  %v747_v5 = vld [vmem:[%s522_s20 + $0x8] sm:$0xff]  ;;  %v618_v6 = vld [vmem:[%s513_s27 + $0x10] sm:$0xff]  ;;  %vm1039_vm1 = vcmask 130048   ;;  %s2845_s12 = scalar_lea.vmem [#allocation18], %s2797_s17  ;;  %s3108_s22 = sld [smem:[#allocation29_spill]] }
 0x12f   : > { %v619_v7 = vld [vmem:[%s513_s27 + $0x18] sm:$0xff]  ;;  %v1758_v8 = vpack.c.bf16 %v747_v5, %v746_v3  ;;  %v748_v10 = vld [vmem:[%s522_s20 + $0x10] sm:$0xff]  ;;  %v620_v12 = vld [vmem:[#allocation8] sm:$0xff]  ;;  %s3109_s16 = sld [smem:[#allocation34_spill]]  ;;  %s1334_s13 = sshll.u32 %s2845_s12, 4  ;;  %s2856_s13 = int_to_ptr.vmem [resolvable:$true] %s1334_s13 }
 0x130   : > { %v1754_v9 = vpack.c.bf16 %v619_v7, %v618_v6  ;;  %v749_v11 = vld [vmem:[%s522_s20 + $0x18] sm:$0xff]  ;;  %1751 = vmatprep.subr.bf16.mxu0 %v1750_v4  ;;  %1716 = vmatprep.mubr.msk.f32.mxu0 %vm648_vm0, %v620_v12  ;;  %v750_v14 = vld [vmem:[#allocation10] sm:$0xff]  ;;  %v876_v16 = vld [vmem:[%s2814_s26 + $0x8] sm:$0xff]  ;;  %s3110_s15 = sld [smem:[#allocation42_spill]]  ;;  %s2866_s9 = scalar_lea.sflag [#allocation19], %s518_s7 }
 0x131   : > { %v1762_v13 = vpack.c.bf16 %v749_v11, %v748_v10  ;;  %1759 = vmatprep.subr.bf16.mxu1 %v1758_v8  ;;  %1753 = vmatpush3.bf16.msra.mxu0 %v1750_v4  ;;  %v875_v15 = vld [vmem:[%s2814_s26] sm:$0xff]  ;;  %v877_v18 = vld [vmem:[%s2814_s26 + $0x10] sm:$0xff]  ;;  %v878_v19 = vld [vmem:[%s2814_s26 + $0x18] sm:$0xff]  ;;  %s2187_s29 = scalar_lea.vmem %s2856_s13, 512  ;;  %s2359_s28 = smov [#allocation18]  }
 0x132   : > { %1761 = vmatpush3.bf16.msra.mxu1 %v1758_v8  ;;  %1755 = vmatprep.subr.bf16.mxu0 %v1754_v9  ;;  %v1766_v17 = vpack.c.bf16 %v876_v16, %v875_v15  ;;  %v621_v20 = vld [vmem:[#allocation8 + $0x8] sm:$0xff]  ;;  %v624_v21 = vld [vmem:[#allocation13] sm:$0xff]  ;;  %v626_v23 = vld [vmem:[#allocation13 + $0x10] sm:$0xff]  ;;  %v1770_v25 = vpack.c.bf16 %v878_v19, %v877_v18  ;;  %p2188_p3 = scmp.ne.s32.totalorder %s2856_s13, %s2187_s29  ;;  %s2191_s3 = sshll.u32 %s2359_s28, 4  ;;  %s2192_s3 = int_to_ptr.vmem [resolvable:$false] %s2191_s3 }
 0x133   : > { %1763 = vmatprep.subr.bf16.mxu1 %v1762_v13  ;;  %1730 = vmatprep.mubr.msk.f32.mxu1 %vm648_vm0, %v750_v14  ;;  %v751_v22 = vld [vmem:[#allocation10 + $0x8] sm:$0xff]  ;;  %v622_v24 = vld [vmem:[#allocation8 + $0x10] sm:$0xff]  ;;  %v623_v27 = vld [vmem:[#allocation8 + $0x18] sm:$0xff]  ;;  %s2193_s11 = scalar_lea.vmem %s2192_s3, 1024  ;;  %p2194_p9 = scmp.lt.s32.totalorder %s2856_s13, %s2192_s3 }
 0x134   : > { %630 = vperm.xlu0 %1927, %v624_v21   ;;  %v752_v26 = vld [vmem:[#allocation10 + $0x10] sm:$0xff]  ;;  %640 = vperm.xlu1 %1928, %v626_v23   ;;  %v753_v28 = vld [vmem:[#allocation10 + $0x18] sm:$0xff]  ;;  %v879_v29 = vld [vmem:[#allocation11] sm:$0xff]  ;;  %s1682_s24 = sshll.u32 %s3108_s22, 9  ;;  %p2195_p10 = scmp.lt.s32.totalorder %s2193_s11, %s2187_s29 }
 0x135   : > { %1757 = vmatpush3.bf16.msra.mxu0 %v1754_v9  ;;  %v881_v30 = vld [vmem:[#allocation11 + $0x10] sm:$0xff]  ;;  %v625_v31 = vld [vmem:[#allocation13 + $0x8] sm:$0xff]  ;;  %v627_v33 = vld [vmem:[#allocation13 + $0x18] sm:$0xff]  ;;  %p3111_p2 = scmp.ne.s32.totalorder %s3109_s16, 0 }
 0x136   : > { %1765 = vmatpush3.bf16.msra.mxu1 %v1762_v13  ;;  %1767 = vmatprep.subr.bf16.mxu0 %v1766_v17  ;;  %v880_v32 = vld [vmem:[#allocation11 + $0x8] sm:$0xff]  ;;  %v882_v34 = vld [vmem:[#allocation11 + $0x18] sm:$0xff]  ;;  %v883_v35 = vld [vmem:[#allocation16] sm:$0xff]  ;;  %s2862_s5 = scalar_lea.hbm %s3110_s15, %s1682_s24  ;;  %p2196_p6 = por %p2195_p10, %p2194_p9 }
 0x137   : > { %1774 = vmatprep.subr.bf16.mxu1 %v1766_v17  ;;  %v884_v36 = vld [vmem:[#allocation16 + $0x8] sm:$0xff]  ;;  %v885_v37 = vld [vmem:[#allocation16 + $0x10] sm:$0xff]  ;;  %v886_v38 = vld [vmem:[#allocation16 + $0x18] sm:$0xff]  ;;  %p2189_p5 = pnand %p2188_p3, %p3111_p2 }
 0x138   : > { %1717 = vmatmul.mubr.msk.f32.vlgmr.msra.gmra.mrb[0].mxu0 %vm648_vm0, %v621_v20  ;;  %635 = vperm.xlu0 %1927, %v625_v31   ;;  %v754_v39 = vld [vmem:[#allocation14] sm:$0xff]  ;;  %v755_v40 = vld [vmem:[#allocation14 + $0x8] sm:$0xff]  ;;  %v756_v41 = vld [vmem:[#allocation14 + $0x10] sm:$0xff] }
 0x139   : > { %1731 = vmatmul.mubr.msk.f32.vlgmr.msra.gmra.mrb[0].mxu1 %vm648_vm0, %v751_v22  ;;  %1769 = vmatpush3.bf16.msra.mxu0 %v1766_v17  ;;  %v757_v42 = vld [vmem:[#allocation14 + $0x18] sm:$0xff]  ;;  %p2190_p1 = pneg %p2189_p5 }
 0x13a   : > { %1776 = vmatpush3.bf16.msra.mxu1 %v1766_v17  ;;  %1719 = vmatprep.mubr.msk.f32.mxu0 %vm648_vm0, %v622_v24 }
 0x13b   : > { %1733 = vmatprep.mubr.msk.f32.mxu1 %vm648_vm0, %v752_v26  ;;  %1771 = vmatprep.subr.bf16.mxu0 %v1770_v25  ;;  %p2197_p0 = pnand %p2196_p6, %p2190_p1 }
 0x13c   : > { %1720 = vmatmul.mubr.msk.f32.gmra.mrb[2].mxu0 %vm648_vm0, %v623_v27  ;;  %1775 = vmatprep.subr.bf16.mxu1 %v1770_v25 }
 0x13d   : > { %1734 = vmatmul.mubr.msk.f32.gmra.mrb[2].mxu1 %vm648_vm0, %v753_v28  ;;  %1773 = vmatpush3.bf16.msra.mxu0 %v1770_v25 }
 0x13e   : > { %1777 = vmatpush3.bf16.msra.mxu1 %v1770_v25  ;;  %1744 = vmatprep.mubr.msk.f32.mxu0 %vm648_vm0, %v879_v29 }
 0x13f   : > { %1747 = vmatprep.mubr.msk.f32.mxu1 %vm648_vm0, %v881_v30  ;;  %645 = vperm.xlu1 %1928, %v627_v33  }
 0x140   : > { %1745 = vmatmul.mubr.msk.f32.vlgmr.msra.gmra.mrb[4].mxu0 %vm648_vm0, %v880_v32  ;;  %889 = vperm.xlu0 %1927, %v883_v35  }
 0x141   : > { %1748 = vmatmul.mubr.msk.f32.vlgmr.msra.gmra.mrb[4].mxu1 %vm648_vm0, %v882_v34 }
 0x143   : > { %894 = vperm.xlu1 %1928, %v884_v36  }
 0x144   : > { %899 = vperm.xlu0 %1927, %v885_v37  }
 0x147   : > { %904 = vperm.xlu1 %1928, %v886_v38  }
 0x148   : > { %760 = vperm.xlu0 %1927, %v754_v39  }
 0x14b   : > { %765 = vperm.xlu1 %1928, %v755_v40  }
 0x14c   : > { %770 = vperm.xlu0 %1927, %v756_v41  }
 0x14f   : > { %775 = vperm.xlu1 %1928, %v757_v42  }
 0x1b3   : > { %v641_v43 = vpop.permute.xlu1 %640  ;;  %v631_v44 = vpop.permute.xlu0 %630 }
 0x1b7   : > { %v636_v46 = vpop.permute.xlu0 %635 }
 0x1be   : > { %v646_v45 = vpop.permute.xlu1 %645 }
 0x1bf   : > { %v890_v48 = vpop.permute.xlu0 %889 }
 0x1c2   : > { %v895_v47 = vpop.permute.xlu1 %894 }
 0x1c3   : > { %v900_v50 = vpop.permute.xlu0 %899 }
 0x1c6   : > { %v905_v49 = vpop.permute.xlu1 %904 }
 0x1c7   : > { %v761_v52 = vpop.permute.xlu0 %760 }
 0x1ca   : > { %v766_v51 = vpop.permute.xlu1 %765 }
 0x1cb   : > { %v771_v0 = vpop.permute.xlu0 %770 }
 0x1ce   : > { %v776_v60 = vpop.permute.xlu1 %775 }
 0x20b   : > { %v1718_v53 = vpop.f32.mrb[0].mxu0 }
 0x20c   : > { %v1732_v54 = vpop.f32.mrb[0].mxu1  ;;  %v733_v55 = vadd.f32 %v1718_v53, %v636_v46  ;;  %v727_v56 = vpop.f32.mrb[1].mxu0 }
 0x20d   : > { %v856_v57 = vpop.f32.mrb[1].mxu1  ;;  %v862_v58 = vadd.f32 %v1732_v54, %v766_v51  ;;  %v728_v1 = vadd.f32 %v727_v56, %v631_v44 }
 0x20e   : > { %v857_v59 = vadd.f32 %v856_v57, %v761_v52  ;;  %1075 = vxpose.xlu0.b32.start.end [1/1] (short) (narrow) %v733_v55, 16 }
 0x20f   : > { %v1721_v61 = vpop.f32.mrb[2].mxu0  ;;  %1654 = vst.msk [vmem:[%s2845_s12 + $0x8] sm:$0xff] %vm1039_vm1, %v862_v58 }
 0x210   : > { %1040 = vst.msk [vmem:[%s2845_s12] sm:$0xff] %vm1039_vm1, %v857_v59  ;;  %v1735_v62 = vpop.f32.mrb[2].mxu1  ;;  %v737_v63 = vpop.f32.mrb[3].mxu0  ;;  %v743_v14 = vadd.f32 %v1721_v61, %v646_v45 }
 0x211   : > { %v866_v2 = vpop.f32.mrb[3].mxu1  ;;  %v872_v3 = vadd.f32 %v1735_v62, %v776_v60  ;;  %v738_v6 = vadd.f32 %v737_v63, %v641_v43 }
 0x212   : > { %v867_v4 = vadd.f32 %v866_v2, %v771_v0 }
 0x213   : > { %v1746_v5 = vpop.f32.mrb[4].mxu0  ;;  %1004 = vxpose.xlu0.b32.start.end [1/1] (short) (narrow) %v728_v1, 16  ;;  %1664 = vst.msk [vmem:[%s2845_s12 + $0x18] sm:$0xff] %vm1039_vm1, %v872_v3 }
 0x214   : > { %1659 = vst.msk [vmem:[%s2845_s12 + $0x10] sm:$0xff] %vm1039_vm1, %v867_v4  ;;  %v1749_v7 = vpop.f32.mrb[4].mxu1  ;;  %v985_v8 = vpop.f32.mrb[5].mxu0  ;;  %v991_v11 = vadd.f32 %v1746_v5, %v895_v47 }
 0x215   : > { %v986_v9 = vadd.f32 %v985_v8, %v890_v48  ;;  %v995_v10 = vpop.f32.mrb[5].mxu1  ;;  %v1001_v13 = vadd.f32 %v1749_v7, %v905_v49 }
 0x216   : > { %v996_v12 = vadd.f32 %v995_v10, %v900_v50 }
 0x217   : > { %1041 = vxpose.xlu1.b32.start.end [1/1] (short) (narrow) %v986_v9, 16 }
 0x218   : > { %1147 = vxpose.xlu0.b32.start.end [1/1] (short) (narrow) %v738_v6, 16 }
 0x21c   : > { %1184 = vxpose.xlu1.b32.start.end [1/1] (short) (narrow) %v996_v12, 16 }
 0x21d   : > { %1112 = vxpose.xlu0.b32.start.end [1/1] (short) (narrow) %v991_v11, 16 }
 0x221   : > { %1256 = vxpose.xlu1.b32.start.end [1/1] (short) (narrow) %v1001_v13, 16 }
 0x222   : > { %1219 = vxpose.xlu0.b32.start.end [1/1] (short) (narrow) %v743_v14, 16 }
 0x223   : > { %2200 = shalt.err (!%p2197_p0)
}
 0x224   : > { %s2201_s23 = scalar_lea.hbm %s2862_s5, 512  ;;  %s2205_s25 = scalar_lea.hbm %s3110_s15, 1024 }
 0x225   : > { %p2202_p12 = scmp.ne.s32.totalorder %s2862_s5, %s2201_s23  ;;  %p2206_p4 = scmp.lt.u32.totalorder %s2862_s5, %s3110_s15 }
 0x226   : > { %p2207_p7 = scmp.lt.u32.totalorder %s2205_s25, %s2201_s23  ;;  %p2209_p3 = scmp.lt.u32.totalorder %s2201_s23, %s2862_s5 }
 0x227   : > { %p2203_p11 = pnand %p2202_p12, %p3111_p2 }
 0x228   : > { %p2208_p8 = por %p2207_p7, %p2206_p4 }
 0x229   : > { %p2204_p13 = pneg %p2203_p11 }
 0x22a   : > { %p2210_p5 = por %p2209_p3, %p2208_p8 }
 0x22c   : > { %p2211_p1 = pnand %p2210_p5, %p2204_p13 }
 0x22e   : > { %2214 = shalt.err (!%p2211_p1)
}
 0x22f   : > { %s2360_s21 = smov 128   ;;  %s2361_s20 = smov 8   ;;  %vm1036_vm2 = vcmask 64512  }
 0x230   : > { %1809 = dma.vmem_to_hbm [thread:$0]  (%p3111_p2), %s2856_s13, 512, %s2862_s5, %s2866_s9, %s2360_s21, %s2360_s21, %s2361_s20  }
 0x231   : > { %s1637_s26 = sshll.u32 %s2794_s10, 6  ;;  %s1681_s30 = sshll.u32 %s3108_s22, 10 }
 0x232   : > { %s2894_s12 = scalar_lea.vmem [#allocation17], %s1637_s26  ;;  %s613_s13 = scalar_lea.vmem [#allocation20], %s1637_s26 }
 0x233   : > { %s1352_s24 = sshll.u32 %s613_s13, 4  ;;  %s3112_s29 = sld [smem:[#allocation43_spill]]  ;;  %s2915_s24 = int_to_ptr.vmem [resolvable:$true] %s1352_s24 }
 0x234   : > { %s1317_s3 = sshll.u32 %s2894_s12, 4  ;;  %s2215_s11 = scalar_lea.vmem %s2915_s24, 1024  ;;  %s2956_s3 = int_to_ptr.vmem [resolvable:$true] %s1317_s3 }
 0x235   : > { %p2216_p9 = scmp.ne.s32.totalorder %s2915_s24, %s2215_s11  ;;  %s2362_s23 = smov [#allocation20]  }
 0x236   : > { %s2219_s14 = sshll.u32 %s2362_s23, 4  ;;  %s2220_s14 = int_to_ptr.vmem [resolvable:$false] %s2219_s14 }
 0x237   : > { %p2217_p10 = pnand %p2216_p9, %p3111_p2  ;;  %s2221_s17 = scalar_lea.vmem %s2220_s14, 2048 }
 0x238   : > { %p2222_p0 = scmp.lt.s32.totalorder %s2915_s24, %s2220_s14  ;;  %p2223_p12 = scmp.lt.s32.totalorder %s2221_s17, %s2215_s11 }
 0x239   : > { %s2922_s28 = scalar_lea.hbm %s3112_s29, %s1681_s30  ;;  %p2218_p6 = pneg %p2217_p10 }
 0x23a   : > { %p2224_p11 = por %p2223_p12, %p2222_p0 }
 0x23c   : > { %p2225_p13 = pnand %p2224_p11, %p2218_p6 }
 0x28e   : > { %v1091_v15 = vpop.trf.xlu0 }
 0x28f   : > { %1652 = vst.msk [vmem:[%s2894_s12 + $0x10] sm:$0xff] %vm1036_vm2, %v1091_v15 }
 0x292   : > { %v1092_v16 = vpop.trf.xlu0 }
 0x293   : > { %1653 = vst.msk [vmem:[%s2894_s12 + $0x18] sm:$0xff] %vm1036_vm2, %v1092_v16 }
 0x296   : > { %v1020_v17 = vpop.trf.xlu0 }
 0x297   : > { %1037 = vst.msk [vmem:[%s2894_s12] sm:$0xff] %vm1036_vm2, %v1020_v17  ;;  %v1057_v18 = vpop.trf.xlu1 }
 0x298   : > { %1073 = vst.msk [vmem:[%s613_s13] sm:$0xff] %vm1036_vm2, %v1057_v18 }
 0x29a   : > { %v1021_v19 = vpop.trf.xlu0 }
 0x29b   : > { %1038 = vst.msk [vmem:[%s2894_s12 + $0x8] sm:$0xff] %vm1036_vm2, %v1021_v19  ;;  %v1058_v20 = vpop.trf.xlu1 }
 0x29c   : > { %1074 = vst.msk [vmem:[%s613_s13 + $0x8] sm:$0xff] %vm1036_vm2, %v1058_v20 }
 0x29e   : > { %v1163_v21 = vpop.trf.xlu0 }
 0x29f   : > { %1657 = vst.msk [vmem:[%s2894_s12 + $0x20] sm:$0xff] %vm1036_vm2, %v1163_v21  ;;  %v1200_v22 = vpop.trf.xlu1 }
 0x2a0   : > { %1660 = vst.msk [vmem:[%s613_s13 + $0x20] sm:$0xff] %vm1036_vm2, %v1200_v22 }
 0x2a2   : > { %v1164_v23 = vpop.trf.xlu0 }
 0x2a3   : > { %1658 = vst.msk [vmem:[%s2894_s12 + $0x28] sm:$0xff] %vm1036_vm2, %v1164_v23  ;;  %v1201_v24 = vpop.trf.xlu1 }
 0x2a4   : > { %1661 = vst.msk [vmem:[%s613_s13 + $0x28] sm:$0xff] %vm1036_vm2, %v1201_v24 }
 0x2a6   : > { %v1128_v25 = vpop.trf.xlu0 }
 0x2a7   : > { %1655 = vst.msk [vmem:[%s613_s13 + $0x10] sm:$0xff] %vm1036_vm2, %v1128_v25  ;;  %v1272_v26 = vpop.trf.xlu1 }
 0x2a8   : > { %1665 = vst.msk [vmem:[%s613_s13 + $0x30] sm:$0xff] %vm1036_vm2, %v1272_v26 }
 0x2aa   : > { %v1129_v27 = vpop.trf.xlu0 }
 0x2ab   : > { %1656 = vst.msk [vmem:[%s613_s13 + $0x18] sm:$0xff] %vm1036_vm2, %v1129_v27  ;;  %v1273_v28 = vpop.trf.xlu1 }
 0x2ac   : > { %1666 = vst.msk [vmem:[%s613_s13 + $0x38] sm:$0xff] %vm1036_vm2, %v1273_v28 }
 0x2ad   : > { %2228 = shalt.err (!%p2225_p13)
}
 0x2ae   : > { %s2229_s25 = scalar_lea.hbm %s2922_s28, 1024  ;;  %s2233_s26 = scalar_lea.hbm %s3112_s29, 2048 }
 0x2af   : > { %p2230_p4 = scmp.ne.s32.totalorder %s2922_s28, %s2229_s25  ;;  %p2234_p3 = scmp.lt.u32.totalorder %s2922_s28, %s3112_s29 }
 0x2b0   : > { %p2235_p5 = scmp.lt.u32.totalorder %s2233_s26, %s2229_s25  ;;  %p2237_p9 = scmp.lt.u32.totalorder %s2229_s25, %s2922_s28 }
 0x2b1   : > { %p2231_p7 = pnand %p2230_p4, %p3111_p2 }
 0x2b2   : > { %p2236_p1 = por %p2235_p5, %p2234_p3 }
 0x2b3   : > { %p2232_p8 = pneg %p2231_p7 }
 0x2b4   : > { %p2238_p10 = por %p2237_p9, %p2236_p1 }
 0x2b6   : > { %p2239_p6 = pnand %p2238_p10, %p2232_p8 }
 0x2b8   : > { %2242 = shalt.err (!%p2239_p6)
}
 0x2b9   : > { %1810 = dma.vmem_to_hbm [thread:$0]  (%p3111_p2), %s2915_s24, 1024, %s2922_s28, %s2866_s9, %s2360_s21, %s2360_s21, %s2361_s20   ;;  %v1235_v29 = vpop.trf.xlu0 }
 0x2ba   : > { %1662 = vst.msk [vmem:[%s2894_s12 + $0x30] sm:$0xff] %vm1036_vm2, %v1235_v29  ;;  %s3113_s23 = sld [smem:[#allocation41_spill]]  ;;  %s1292_s17 = scalar_lea.sflag [#allocation4], %s2794_s10 }
 0x2bb   : > { %s2243_s9 = scalar_lea.vmem %s2956_s3, 1024  ;;  %s2363_s24 = smov [#allocation17]  }
 0x2bc   : > { %p2244_p0 = scmp.ne.s32.totalorder %s2956_s3, %s2243_s9  ;;  %s2247_s28 = sshll.u32 %s2363_s24, 4  ;;  %s2248_s28 = int_to_ptr.vmem [resolvable:$false] %s2247_s28 }
 0x2bd   : > { %v1236_v30 = vpop.trf.xlu0  ;;  %s2249_s22 = scalar_lea.vmem %s2248_s28, 2048  ;;  %p2250_p13 = scmp.lt.s32.totalorder %s2956_s3, %s2248_s28 }
 0x2be   : > { %1663 = vst.msk [vmem:[%s2894_s12 + $0x38] sm:$0xff] %vm1036_vm2, %v1236_v30  ;;  %p2245_p12 = pnand %p2244_p0, %p3111_p2  ;;  %p2251_p4 = scmp.lt.s32.totalorder %s2249_s22, %s2243_s9 }
 0x2c0   : > { %s2963_s14 = scalar_lea.hbm %s3113_s23, %s1681_s30  ;;  %p2246_p11 = pneg %p2245_p12 }
 0x2c1   : > { %p2252_p7 = por %p2251_p4, %p2250_p13 }
 0x2c3   : > { %p2253_p8 = pnand %p2252_p7, %p2246_p11 }
 0x2c5   : > { %2256 = shalt.err (!%p2253_p8)
}
 0x2c6   : > { %s2257_s12 = scalar_lea.hbm %s2963_s14, 1024  ;;  %s2261_s27 = scalar_lea.hbm %s3113_s23, 2048 }
 0x2c7   : > { %p2258_p3 = scmp.ne.s32.totalorder %s2963_s14, %s2257_s12  ;;  %p2262_p9 = scmp.lt.u32.totalorder %s2963_s14, %s3113_s23 }
 0x2c8   : > { %p2263_p10 = scmp.lt.u32.totalorder %s2261_s27, %s2257_s12  ;;  %p2265_p0 = scmp.lt.u32.totalorder %s2257_s12, %s2963_s14 }
 0x2c9   : > { %p2259_p5 = pnand %p2258_p3, %p3111_p2 }
 0x2ca   : > { %p2264_p6 = por %p2263_p10, %p2262_p9 }
 0x2cb   : > { %p2260_p1 = pneg %p2259_p5 }
 0x2cc   : > { %p2266_p12 = por %p2265_p0, %p2264_p6 }
 0x2ce   : > { %p2267_p11 = pnand %p2266_p12, %p2260_p1 }
 0x2d0   : > { %2270 = shalt.err (!%p2267_p11)
}
 0x2d1   : > { %1808 = dma.vmem_to_hbm [thread:$0]  (%p3111_p2), %s2956_s3, 1024, %s2963_s14, %s1292_s17, %s2360_s21, %s2360_s21, %s2361_s20  }
 0x2d2 PF: > { %s3114_s13 = sld [smem:[#allocation28_spill]]  ;;  %s3115_s1 = sld [smem:[#allocation36_spill]] }
 0x2d3   : > { %s3116_s5 = sld [smem:[#allocation31_spill]] }
 0x2d8   : > { %s1367_s11 = sand.u32 1, %s3114_s13   ;;  %p3117_p13 = scmp.ne.s32.totalorder %s3115_s1, 0 }
 0x2d9   : > { %p3118_p4 = scmp.ge.s32.totalorder %s3116_s5, 2  ;;  %s1368_s9 = scalar_lea.sflag [#allocation4], %s1367_s11 }
 0x2db   : > { %p1844_p7 = pnand %p3118_p4, %p3117_p13 }
 0x2dd   : > { %2316 = dma.done.wait (!%p1844_p7), %s1368_s9, 1024  }
 0x2de   : > { %2318 = vsyncadd (!%p1844_p7), %s1368_s9, 4294966272  ;;  %s3119_s16 = sadd.s32 4294967294, %s3116_s5  }
 0x2df   : > { %s1376_s24 = sand.u32 1, %s3119_s16  }
 0x2e0   : > { %s1377_s28 = scalar_lea.sflag [#allocation19], %s1376_s24 }
 0x2e1   : > { %2320 = dma.done.wait (!%p1844_p7), %s1377_s28, 1536  }
 0x2e2   : > { %2322 = vsyncadd (!%p1844_p7), %s1377_s28, 4294965760  ;;  %s37_s22 = sadd.s32 1, %s3116_s5   ;;  %s3120_s10 = sld [smem:[#allocation35_spill]] }
 0x2e3   : > { %p34_p2 = scmp.ge.s32.totalorder %s37_s22, 4   ;;  %s3121_s20 = sld [smem:[#allocation30_spill]] }
 0x2e4   : > { %s3122_s21 = sld [smem:[#allocation33_spill]]  ;;  %s3123_s17 = smov %s2329_s18 }
 0x2e5   : > { %s3124_s18 = smov %s2333_s19  ;;  %36 = sbr.rel (!%p34_p2) target bundleno = 21 (0x15), region = 190 }
 0x2e8   : > { %s3125_s19 = smov %s3120_s10 }
 0x2ec   :  { %1391 = vsyncpa [#allocation3], 1 }
 0x2ed   :  { %1393 = vsyncpa [#allocation3 + $0x1], 1 }
 0x2ee   :  { %1394 = vsyncpa [#allocation6], 1 }
 0x2ef   :  { %1396 = vsyncpa [#allocation6 + $0x1], 1 }
 0x2f0   :  { %1397 = vsyncpa [#allocation9], 1 }
 0x2f1   :  { %1398 = vsyncpa [#allocation12], 1 }
 0x2f2   :  { %1399 = vsyncpa [#allocation15], 1 }
 0x2f3   :  { %1400 = vsyncpa [#allocation4], 1 }
 0x2f4   :  { %1402 = vsyncpa [#allocation4 + $0x1], 1 }
 0x2f5   :  { %1403 = vsyncpa [#allocation19], 1 }
 0x2f6   :  { %1405 = vsyncpa [#allocation19 + $0x1], 1 }

</bundles_post_ra>
